<compile_context>
chip_gen: v7x
topology: tpu7x:2x2x1
jax: 0.10.0
libtpu: 0.0.40
codegen_flags: <defaults>
</compile_context>

<pallas_src>
import jax
import jax.numpy as jnp
from jax.experimental import pallas as pl
from jax.experimental.pallas import tpu as pltpu


def _round_up(n: int, m: int) -> int:
    return (n + m - 1) // m * m


# ----------------------------- kernels --------------------------------------


def _ls_kernel_multi_k(x_ref, w_ref, h_ref, b_ref, o_ref, acc_ref):
    """Grid = (M tiles, N tiles, K tiles); K (last axis) is the reduction."""
    k = pl.program_id(2)

    @pl.when(k == 0)
    def _():
        # Fold the bias into the accumulator init (saves a VPU add at finalize).
        acc_ref[...] = jnp.broadcast_to(
            b_ref[...].astype(jnp.float32), acc_ref.shape)

    # Canonical (m,k) x (k,n) MXU contraction with f32 accumulation.
    acc_ref[...] += jnp.dot(x_ref[...], w_ref[...],
                            preferred_element_type=jnp.float32)

    @pl.when(k == pl.num_programs(2) - 1)
    def _():
        o_ref[...] = jnp.tanh(
            h_ref[...].astype(jnp.float32) + acc_ref[...]).astype(o_ref.dtype)


def _ls_kernel_single_k(x_ref, w_ref, h_ref, b_ref, o_ref):
    """K fits in a single tile: no reduction axis, no scratch accumulator."""
    fc = jnp.dot(x_ref[...], w_ref[...], preferred_element_type=jnp.float32)
    fc = fc + b_ref[...].astype(jnp.float32)
    o_ref[...] = jnp.tanh(h_ref[...].astype(jnp.float32) + fc).astype(o_ref.dtype)


# --------------------------- parameter setup ---------------------------------


def make_linear_squeeze(weight, bias, *, compute_dtype=None, use_pallas=None):
    """One-time parameter prep for LinearSqueeze.

    weight: (out, inp) in PyTorch nn.Linear layout; bias: (out,).
    Returns forward(x, h) computing tanh(h + x @ weight.T + bias).
    Weight transpose/padding (and optional bf16 cast) happen HERE, once,
    outside the per-call hot path.
    """
    weight = jnp.asarray(weight)
    bias = jnp.asarray(bias)
    N, K = weight.shape
    compute_dtype = (weight.dtype if compute_dtype is None
                     else jnp.dtype(compute_dtype))

    # Per-generation VMEM budget (v5e/v6e: 128 MiB, v7x: 64 MiB).
    try:
        vmem_cap = int(pltpu.get_tpu_info().vmem_capacity_bytes)
    except Exception:
        vmem_cap = 64 << 20  # conservative (v7x-sized) default
    small_vmem = vmem_cap < (96 << 20)

    if small_vmem:            # v7x-like: 64 MiB VMEM
        tm_cap, tn_cap, tk_cap = 256, 512, 1024
        vmem_limit = 40 << 20
    else:                     # v5e / v6e: 128 MiB VMEM
        tm_cap, tn_cap, tk_cap = 512, 512, 2048
        vmem_limit = 64 << 20

    tn = min(tn_cap, _round_up(N, 128))
    tk = min(tk_cap, _round_up(K, 128))
    Np = _round_up(N, tn)
    Kp = _round_up(K, tk)

    # One-time layout: (out, inp) -> (inp, out) == (K, N), padded to (Kp, Np).
    w_kn = jnp.pad(weight.T.astype(compute_dtype), ((0, Kp - K), (0, Np - N)))
    b_row = jnp.pad(bias.astype(jnp.float32), (0, Np - N)).reshape(1, Np)

    @jax.jit
    def _fwd_pallas(x, h, w_kn, b_row):
        B = x.shape[0]
        out_dtype = h.dtype

        tm = min(tm_cap, _round_up(B, 8))
        Mp = _round_up(B, tm)

        tn_run = tn
        # v7x: guarantee the parallel grid extent is >= 2 so both TensorCores
        # get work (splitting N only re-streams the small x, never W).
        if small_vmem and Mp // tm == 1 and Np // tn_run == 1 and Np % 256 == 0:
            tn_run = Np // 2

        x_c = x.astype(compute_dtype)
        xp = x_c if (Mp == B and Kp == K) else jnp.pad(
            x_c, ((0, Mp - B), (0, Kp - K)))
        h_padded = not (Mp == B and Np == N)
        hp = h if not h_padded else jnp.pad(h, ((0, Mp - B), (0, Np - N)))

        num_k = Kp // tk
        mi, nj = Mp // tm, Np // tn_run

        flops = 2 * Mp * Np * Kp
        bytes_accessed = (xp.size * xp.dtype.itemsize * nj
                          + w_kn.size * w_kn.dtype.itemsize * mi
                          + hp.size * hp.dtype.itemsize
                          + Mp * Np * jnp.dtype(out_dtype).itemsize)
        cost = pl.CostEstimate(flops=flops, transcendentals=Mp * Np,
                               bytes_accessed=bytes_accessed)

        # Alias output onto h only when hp is a freshly padded buffer (so
        # donation is always legal and never forces an XLA copy).
        io_alias = {2: 0} if h_padded else {}

        if num_k > 1:
            out = pl.pallas_call(
                _ls_kernel_multi_k,
                out_shape=jax.ShapeDtypeStruct((Mp, Np), out_dtype),
                grid_spec=pltpu.PrefetchScalarGridSpec(
                    num_scalar_prefetch=0,
                    grid=(mi, nj, num_k),
                    in_specs=[
                        pl.BlockSpec((tm, tk), lambda i, j, k: (i, k)),      # x
                        pl.BlockSpec((tk, tn_run), lambda i, j, k: (k, j)),  # W (K,N)
                        pl.BlockSpec((tm, tn_run), lambda i, j, k: (i, j)),  # h
                        pl.BlockSpec((1, tn_run), lambda i, j, k: (0, j)),   # bias
                    ],
                    out_specs=pl.BlockSpec((tm, tn_run), lambda i, j, k: (i, j)),
                    scratch_shapes=[pltpu.VMEM((tm, tn_run), jnp.float32)],
                ),
                compiler_params=pltpu.CompilerParams(
                    dimension_semantics=("parallel", "parallel", "arbitrary"),
                    vmem_limit_bytes=vmem_limit,
                ),
                cost_estimate=cost,
                input_output_aliases=io_alias,
            )(xp, w_kn, hp, b_row)
        else:
            out = pl.pallas_call(
                _ls_kernel_single_k,
                out_shape=jax.ShapeDtypeStruct((Mp, Np), out_dtype),
                grid_spec=pltpu.PrefetchScalarGridSpec(
                    num_scalar_prefetch=0,
                    grid=(mi, nj),
                    in_specs=[
                        pl.BlockSpec((tm, Kp), lambda i, j: (i, 0)),         # x
                        pl.BlockSpec((Kp, tn_run), lambda i, j: (0, j)),     # W (K,N)
                        pl.BlockSpec((tm, tn_run), lambda i, j: (i, j)),     # h
                        pl.BlockSpec((1, tn_run), lambda i, j: (0, j)),      # bias
                    ],
                    out_specs=pl.BlockSpec((tm, tn_run), lambda i, j: (i, j)),
                ),
                compiler_params=pltpu.CompilerParams(
                    dimension_semantics=("parallel", "parallel"),
                    vmem_limit_bytes=vmem_limit,
                ),
                cost_estimate=cost,
                input_output_aliases=io_alias,
            )(xp, w_kn, hp, b_row)

        return out[:B, :N]

    @jax.jit
    def _fwd_small(x, h, w_kn, b_row):
        # Tiny-shape fallback: padding + launch overhead would dominate; let
        # XLA fuse the whole thing.
        fc = jnp.dot(x.astype(compute_dtype), w_kn[:K, :N],
                     preferred_element_type=jnp.float32)
        return jnp.tanh(h.astype(jnp.float32) + fc + b_row[0, :N]).astype(h.dtype)

    def forward(x, h):
        go_pallas = use_pallas
        if go_pallas is None:
            go_pallas = (x.shape[0] * N * K) >= (8 * 128 * 128)
        if go_pallas:
            return _fwd_pallas(x, h, w_kn, b_row)
        return _fwd_small(x, h, w_kn, b_row)

    return forward


# --------------------------------- demo --------------------------------------


def _torch_linear_init(key, out_f, in_f, dtype=jnp.float32):
    """Deterministic nn.Linear-style init: U(-1/sqrt(in), 1/sqrt(in))."""
    kw, kb = jax.random.split(key)
    bound = 1.0 / (in_f ** 0.5)
    w = jax.random.uniform(kw, (out_f, in_f), minval=-bound, maxval=bound,
                           dtype=dtype)
    b = jax.random.uniform(kb, (out_f,), minval=-bound, maxval=bound,
                           dtype=dtype)
    return w, b


if __name__ == "__main__":
    key = jax.random.PRNGKey(0)
    k1, k2, k3, k4, k5, k6 = jax.random.split(key, 6)

    # --- Test 1: aligned shapes, single-K-tile kernel path -------------------
    B, inp, out = 16, 128, 256
    x = jax.random.normal(k1, (B, inp), dtype=jnp.float32)
    h = jax.random.normal(k2, (B, out), dtype=jnp.float32)
    weight, bias = _torch_linear_init(k3, out, inp)

    fwd = make_linear_squeeze(weight, bias, compute_dtype=jnp.float32,
                              use_pallas=True)
    y = fwd(x, h)
    jax.block_until_ready(y)

    ref = jnp.tanh(h + (jnp.dot(x, weight.T,
                                precision=jax.lax.Precision.HIGHEST) + bias))
    assert y.shape == ref.shape, "test1: shape mismatch vs reference"
    assert jnp.allclose(y, ref, atol=1e-4, rtol=1e-4), "test1: mismatch vs ref"

    # --- Test 2: misaligned shapes, multi-K-tile reduction + padding + alias -
    B2, inp2, out2 = 20, 2304, 200
    x2 = jax.random.normal(k4, (B2, inp2), dtype=jnp.float32)
    h2 = jax.random.normal(k5, (B2, out2), dtype=jnp.float32)
    weight2, bias2 = _torch_linear_init(k6, out2, inp2)

    fwd2 = make_linear_squeeze(weight2, bias2, compute_dtype=jnp.float32,
                               use_pallas=True)
    y2 = fwd2(x2, h2)
    jax.block_until_ready(y2)

    ref2 = jnp.tanh(h2 + (jnp.dot(x2, weight2.T,
                                  precision=jax.lax.Precision.HIGHEST) + bias2))
    assert y2.shape == ref2.shape, "test2: shape mismatch vs reference"
    assert jnp.allclose(y2, ref2, atol=1e-4, rtol=1e-4), "test2: mismatch vs ref"

    print("KERNEL_OK")
</pallas_src>

<mosaic_0001>
module attributes {stable_mosaic.version = 11 : i64} {
  func.func @_ls_kernel_single_k(%arg0: i32, %arg1: i32, %arg2: memref<16x128xf32, #tpu.memory_space<vmem>>, %arg3: memref<128x128xf32, #tpu.memory_space<vmem>>, %arg4: memref<16x128xf32, #tpu.memory_space<vmem>>, %arg5: memref<1x128xf32, #tpu.memory_space<vmem>>, %arg6: memref<16x128xf32, #tpu.memory_space<vmem>>) attributes {dimension_semantics = [#tpu.dimension_semantics<parallel>, #tpu.dimension_semantics<parallel>], iteration_bounds = array<i64: 1, 2>, scalar_prefetch = 0 : i64, scratch_operands = 0 : i64, tpu.core_type = #tpu.core_type<tc>, window_params = [{transform_indices = @transform_0, window_bounds = array<i64: 16, 128>}, {transform_indices = @transform_1, window_bounds = array<i64: 128, 128>}, {transform_indices = @transform_2, window_bounds = array<i64: 16, 128>}, {transform_indices = @transform_3, window_bounds = array<i64: 1, 128>}, {transform_indices = @transform_4, window_bounds = array<i64: 16, 128>}]} {
    %c0 = arith.constant 0 : index
    %c0_0 = arith.constant 0 : index
    %0 = vector.load %arg2[%c0, %c0_0] : memref<16x128xf32, #tpu.memory_space<vmem>>, vector<16x128xf32>
    %c0_1 = arith.constant 0 : index
    %c0_2 = arith.constant 0 : index
    %1 = vector.load %arg3[%c0_1, %c0_2] : memref<128x128xf32, #tpu.memory_space<vmem>>, vector<128x128xf32>
    %cst = arith.constant dense<0.000000e+00> : vector<16x128xf32>
    %2 = tpu.matmul %0, %1, %cst {dimension_numbers = #tpu.dot_dimension_numbers<[1], [0], [0], [1], [0, 0, 1, 1], [], []>} : vector<16x128xf32>, vector<128x128xf32>, vector<16x128xf32> -> vector<16x128xf32>
    %c0_3 = arith.constant 0 : index
    %c0_4 = arith.constant 0 : index
    %3 = vector.load %arg5[%c0_3, %c0_4] : memref<1x128xf32, #tpu.memory_space<vmem>>, vector<1x128xf32>
    %4 = vector.broadcast %3 : vector<1x128xf32> to vector<16x128xf32>
    %5 = arith.addf %2, %4 : vector<16x128xf32>
    %c0_5 = arith.constant 0 : index
    %c0_6 = arith.constant 0 : index
    %6 = vector.load %arg4[%c0_5, %c0_6] : memref<16x128xf32, #tpu.memory_space<vmem>>, vector<16x128xf32>
    %7 = arith.addf %6, %5 : vector<16x128xf32>
    %8 = math.tanh %7 : vector<16x128xf32>
    %c0_7 = arith.constant 0 : index
    %c0_8 = arith.constant 0 : index
    %9 = vector.load %arg6[%c0_7, %c0_8] : memref<16x128xf32, #tpu.memory_space<vmem>>, vector<16x128xf32>
    tpu.vector_store %arg6[%c0_7, %c0_8], %8 {strides = array<i32>} : memref<16x128xf32, #tpu.memory_space<vmem>>, vector<16x128xf32>,
    return
  }
  func.func @transform_0(%arg0: i32, %arg1: i32) -> (i32, i32) {
    %c0_i32 = arith.constant 0 : i32
    %c0_i32_0 = arith.constant 0 : i32
    return %arg0, %c0_i32 : i32, i32
  }
  func.func @transform_1(%arg0: i32, %arg1: i32) -> (i32, i32) {
    %c0_i32 = arith.constant 0 : i32
    %c0_i32_0 = arith.constant 0 : i32
    return %c0_i32, %arg1 : i32, i32
  }
  func.func @transform_2(%arg0: i32, %arg1: i32) -> (i32, i32) {
    %c0_i32 = arith.constant 0 : i32
    return %arg0, %arg1 : i32, i32
  }
  func.func @transform_3(%arg0: i32, %arg1: i32) -> (i32, i32) {
    %c0_i32 = arith.constant 0 : i32
    %c0_i32_0 = arith.constant 0 : i32
    return %c0_i32, %arg1 : i32, i32
  }
  func.func @transform_4(%arg0: i32, %arg1: i32) -> (i32, i32) {
    %c0_i32 = arith.constant 0 : i32
    return %arg0, %arg1 : i32, i32
  }
}

</mosaic_0001>

<bundles_post_ra>
// kernel: _fwd_pallas.1
= control target key start
LH: loop header
LB: loop body
LE: loop exit
PB: predicated region body
PF: predicated region fallthrough
CT: control target
= control target key end

     0   :  { %9 = vsyncpa [#allocation3], 0  ;;  %s1262_s0 = inlined_call_operand.hbm [shape: f32[16,128], index: 0, kind: input, shape index: {}]   ;;  %s1263_s1 = inlined_call_operand.hbm [shape: f32[128,256], index: 1, kind: input, shape index: {}]   ;;  %s1264_s2 = inlined_call_operand.hbm [shape: f32[16,256], index: 2, kind: input, shape index: {}]   ;;  %s1265_s3 = inlined_call_operand.vmem [shape: f32[1,256], index: 3, kind: input, shape index: {}]   ;;  %s1266_s4 = inlined_call_operand.hbm [shape: f32[16,256], index: 4, kind: output, shape index: {}]  }
   0x1   :  { %10 = vsyncpa [#allocation6], 0 }
   0x2   :  { %12 = vsyncpa [#allocation6 + $0x1], 0 }
   0x3   :  { %13 = vsyncpa [#allocation4], 0 }
   0x4   :  { %15 = vsyncpa [#allocation4 + $0x1], 0  ;;  %s965_s15 = smov 0   ;;  %s967_s16 = smov 0  }
   0x5   :  { %s969_s17 = smov 0   ;;  %s971_s18 = smov 0  }
   0x6   :  { %s973_s19 = smov 0   ;;  %s975_s20 = smov 0  }
   0x7 LB: > { %s30_s21 = sadd.s32 1, %s924_s19  ;;  %s66_s22 = sadd.s32 1, %s916_s17  ;;  %s928_s20 = sphi %s975_s20, %s21_s20   ;;  %s924_s19 = sphi %s973_s19, %s1296_s19   ;;  %s920_s18 = sphi %s971_s18, %s1295_s18   ;;  %s916_s17 = sphi %s969_s17, %s1294_s17   ;;  %s912_s16 = sphi %s967_s16, %s1293_s16   ;;  %s908_s15 = sphi %s965_s15, %s1292_s15  }
   0x8   : > { %p31_p0 = scmp.ge.s32.totalorder %s30_s21, 2  ;;  %p73_p1 = scmp.ne.s32.totalorder %s916_s17, %s912_s16 }
   0x9   : > { %p74_p2 = scmp.eq.s32.totalorder %s928_s20, 0  ;;  %p692_p6 = scmp.lt.s32.totalorder %s928_s20, 2 }
   0xa   : > { %s1298_s21 = smov (%p31_p0, %s30_s21), 0  ;;  %s201_s25 = sand.u32 1, %s928_s20  }
   0xb   : > { %p1005_p3 = por %p74_p2, %p73_p1  ;;  %s63_s24 = ssub.s32 %s924_s19, %s1298_s21 }
   0xc   : > { %p64_p5 = scmp.eq.s32.totalorder %s63_s24, 0  ;;  %s203_s26 = sand.u32 1, %s916_s17  }
   0xd   : > { %s567_s28 = sshll.u32 %s203_s26, 7  ;;  %s568_s29 = sshll.u32 %s924_s19, 7 }
   0xe   : > { %s1016_s27 = scalar_select %p64_p5, %s916_s17, %s66_s22  }
   0xf   : > { %s1024_s6 = scalar_lea.hbm %s1263_s1, %s568_s29  ;;  %s205_s7 = scalar_lea.vmem [#allocation5], %s567_s28 }
  0x10   : > { %s211_s8 = sshll.u32 %s205_s7, 4  ;;  %p1030_p7 = pnand %p692_p6, %p1005_p3  ;;  %s1026_s8 = int_to_ptr.vmem [resolvable:$true] %s211_s8 }
  0x11   : > { %s1034_s10 = sshll.u32 %s203_s26, 4  ;;  %s1036_s11 = scalar_lea.sflag [#allocation6], %s201_s25 }
  0x12   : > { %s754_s12 = scalar_lea.hbm %s1024_s6, 2048  ;;  %p756_p9 = pneg %p1030_p7 }
  0x13   : > { %p755_p8 = scmp.ne.s32.totalorder %s1024_s6, %s754_s12  ;;  %s759_s22 = scalar_lea.hbm %s1263_s1, 4096 }
  0x14   : > { %p760_p12 = scmp.lt.u32.totalorder %s1024_s6, %s1263_s1  ;;  %p761_p13 = scmp.lt.u32.totalorder %s759_s22, %s754_s12 }
  0x15   : > { %p757_p10 = pnand %p756_p9, %p755_p8  ;;  %p763_p2 = scmp.lt.u32.totalorder %s754_s12, %s1024_s6 }
  0x16   : > { %p762_p0 = por %p761_p13, %p760_p12 }
  0x17   : > { %p758_p11 = pneg %p757_p10 }
  0x18   : > { %p764_p3 = por %p763_p2, %p762_p0 }
  0x1a   : > { %p765_p5 = pnand %p764_p3, %p758_p11 }
  0x1c   : > { %768 = shalt.err (!%p765_p5)
}
  0x1d   : > { %s769_s25 = scalar_lea.vmem %s1026_s8, 2048  ;;  %s930_s26 = smov [#allocation5]  }
  0x1e   : > { %p770_p6 = scmp.ne.s32.totalorder %s1026_s8, %s769_s25  ;;  %s774_s28 = sshll.u32 %s930_s26, 4  ;;  %s775_s28 = int_to_ptr.vmem [resolvable:$false] %s774_s28 }
  0x1f   : > { %s776_s30 = scalar_lea.vmem %s775_s28, 4096  ;;  %p777_p4 = scmp.lt.s32.totalorder %s1026_s8, %s775_s28 }
  0x20   : > { %p772_p8 = pnand %p770_p6, %p756_p9  ;;  %p778_p12 = scmp.lt.s32.totalorder %s776_s30, %s769_s25 }
  0x22   : > { %p773_p10 = pneg %p772_p8  ;;  %p779_p13 = por %p778_p12, %p777_p4 }
  0x24   : > { %p780_p0 = pnand %p779_p13, %p773_p10 }
  0x26   : > { %783 = shalt.err (!%p780_p0)
}
  0x27   : > { %s1267_s5 = smov 256   ;;  %s1268_s7 = smov 128  }
  0x28   : > { %s933_s12 = smov 8   ;;  %s1072_s22 = scalar_lea.hbm %s1264_s2, %s568_s29 }
  0x29   : > { %683 = dma.hbm_to_vmem [thread:$0]  (!%p1030_p7), %s1024_s6, 2048, %s1026_s8, %s1036_s11, %s1267_s5, %s1268_s7, %s933_s12  }
  0x2a   : > { %s225_s23 = scalar_lea.vmem [#allocation7], %s1034_s10  ;;  %s1076_s25 = sadd.s32 4294967295, %s928_s20  }
  0x2b   : > { %s234_s24 = sshll.u32 %s225_s23, 4  ;;  %s563_s26 = sadd.s32 4294967294, %s928_s20   ;;  %s1102_s24 = int_to_ptr.vmem [resolvable:$true] %s234_s24 }
  0x2c   : > { %p79_p4 = scmp.ne.s32.totalorder %s912_s16, %s908_s15  ;;  %p1270_p11 = scmp.eq.s32.totalorder %s1076_s25, 0 }
  0x2d   : > { %p159_p2 = scmp.eq.s32.totalorder %s1076_s25, 1  ;;  %p165_p3 = scmp.eq.s32.totalorder %s563_s26, 1 }
  0x2e   : > { %p564_p5 = scmp.ge.s32.totalorder %s928_s20, 1  ;;  %p1086_p6 = por %p1270_p11, %p79_p4 }
  0x2f   : > { %p1093_p8 = por %p159_p2, %p73_p1  ;;  %p1097_p10 = por %p165_p3, %p79_p4 }
  0x30   : > { %s1276_s29 = scalar_select %p1086_p6, 1, 0 }
  0x31   : > { %s1277_s6 = scalar_select %p1093_p8, 1, 0 }
  0x32   : > { %s1278_s8 = scalar_select %p1097_p10, 1, 0 }
  0x33   : > { %p172_p12 = scmp.lt.s32.totalorder %s928_s20, 3  ;;  %s934_s28 = smov [#allocation2]  }
  0x34   : > { %s1108_s30 = sshll.u32 %s934_s28, 4  ;;  %s784_s13 = scalar_lea.hbm %s1072_s22, 256  ;;  %s188_s30 = int_to_ptr.vmem [resolvable:$true] %s1108_s30 }
  0x35   : > { %p1104_p13 = pnand %p564_p5, %p172_p12  ;;  %p785_p0 = scmp.ne.s32.totalorder %s1072_s22, %s784_s13 }
  0x36   : > { %s789_s26 = scalar_lea.hbm %s1264_s2, 512  ;;  %p790_p3 = scmp.lt.u32.totalorder %s1072_s22, %s1264_s2 }
  0x37   : > { %s1279_s10 = scalar_select %p1104_p13, 1, 0 }
  0x38   : > { %p787_p4 = pnand %p785_p0, %p756_p9  ;;  %p791_p5 = scmp.lt.u32.totalorder %s789_s26, %s784_s13 }
  0x39   : > { %p793_p11 = scmp.lt.u32.totalorder %s784_s13, %s1072_s22 }
  0x3a   : > { %p788_p2 = pneg %p787_p4  ;;  %p792_p12 = por %p791_p5, %p790_p3 }
  0x3c   : > { %p794_p10 = por %p793_p11, %p792_p12 }
  0x3e   : > { %p795_p8 = pnand %p794_p10, %p788_p2 }
  0x40   : > { %798 = shalt.err (!%p795_p8)
}
  0x41   : > { %s799_s28 = scalar_lea.vmem %s1102_s24, 256  ;;  %s935_s14 = smov [#allocation7]  }
  0x42   : > { %p800_p0 = scmp.ne.s32.totalorder %s1102_s24, %s799_s28  ;;  %s804_s23 = sshll.u32 %s935_s14, 4  ;;  %s805_s23 = int_to_ptr.vmem [resolvable:$false] %s804_s23 }
  0x43   : > { %s806_s5 = scalar_lea.vmem %s805_s23, 512  ;;  %p807_p6 = scmp.lt.s32.totalorder %s1102_s24, %s805_s23 }
  0x44   : > { %p802_p4 = pnand %p800_p0, %p756_p9  ;;  %p808_p3 = scmp.lt.s32.totalorder %s806_s5, %s799_s28 }
  0x46   : > { %p803_p1 = pneg %p802_p4  ;;  %p809_p5 = por %p808_p3, %p807_p6 }
  0x48   : > { %p810_p11 = pnand %p809_p5, %p803_p1 }
  0x4a   : > { %813 = shalt.err (!%p810_p11)
}
  0x4b   : > { %s1280_s7 = smov 128   ;;  %s1281_s13 = smov 256  }
  0x4c   : > { %686 = dma.hbm_to_vmem [thread:$0]  (!%p1030_p7), %s1072_s22, 256, %s1102_s24, %s1036_s11, %s1281_s13, %s1280_s7, %s933_s12  }
  0x4d   : > { %p1282_p9 = scmp.eq.s32.totalorder %s1076_s25, 0  ;;  %p1283_p8 = pneg %p1104_p13 }
  0x4e   : > { %s814_s14 = scalar_lea.hbm %s1262_s0, 256 }
  0x4f   : > { %p1145_p10 = pnand %p1283_p8, %p1282_p9  ;;  %p815_p6 = scmp.ne.s32.totalorder %s1262_s0, %s814_s14 }
  0x50   : > { %p821_p12 = scmp.lt.u32.totalorder %s814_s14, %s1262_s0 }
  0x51   : > { %p816_p1 = pneg %p1145_p10 }
  0x53   : > { %p817_p7 = pnand %p816_p1, %p815_p6 }
  0x55   : > { %p818_p2 = pneg %p817_p7 }
  0x57   : > { %p823_p0 = pnand %p821_p12, %p818_p2 }
  0x59   : > { %826 = shalt.err (!%p823_p0)
}
  0x5a   : > { %s827_s24 = scalar_lea.vmem %s188_s30, 256  ;;  %p835_p11 = scmp.lt.s32.totalorder %s188_s30, %s188_s30 }
  0x5b   : > { %p828_p4 = scmp.ne.s32.totalorder %s188_s30, %s827_s24  ;;  %p836_p9 = scmp.lt.s32.totalorder %s827_s24, %s827_s24 }
  0x5d   : > { %p830_p3 = pnand %p828_p4, %p816_p1  ;;  %p837_p8 = por %p836_p9, %p835_p11 }
  0x5f   : > { %p831_p5 = pneg %p830_p3 }
  0x61   : > { %p838_p13 = pnand %p837_p8, %p831_p5 }
  0x63   : > { %841 = shalt.err (!%p838_p13)
}
  0x64   : > { %679 = dma.hbm_to_vmem [thread:$0]  (!%p1145_p10), %s1262_s0, 256, %s188_s30, [#allocation3], %s1280_s7, %s1280_s7, %s933_s12  }
  0x65   : > { %p1285_p6 = scmp.ne.s32.totalorder %s1279_s10, 0 }
  0x66   : > { %p1286_p1 = scmp.eq.s32.totalorder (!%p1285_p6), %s1076_s25, 0 }
  0x67   : > { %252 = sbr.rel (%p1285_p6) target bundleno = 395 (0x18b), region = 36 }
  0x6e   : > { %895 = dma.done.wait (%p1286_p1), [#allocation3], 256   ;;  %p1287_p7 = pmov %p1286_p1 }
  0x6f   : > { %s258_s26 = sand.u32 1, %s1076_s25   ;;  %s1176_s9 = sand.u32 1, %s912_s16  }
  0x70   : > { %897 = vsyncadd (%p1287_p7), [#allocation3], 4294967040  ;;  %s573_s14 = sshll.u32 %s1176_s9, 7  ;;  %s259_s23 = scalar_lea.sflag [#allocation6], %s258_s26 }
  0x71   : > { %s1179_s5 = scalar_lea.vmem [#allocation5], %s573_s14  ;;  %p1288_p13 = scmp.ne.s32.totalorder %s1276_s29, 0 }
  0x73   : > { %899 = dma.done.wait (%p1288_p13), %s259_s23, 2304  }
  0x74   : > { %901 = vsyncadd (%p1288_p13), %s259_s23, 4294964992  ;;  %v312_v0 = vld [vmem:[%s1179_s5] sm:$0xff]  ;;  %v313_v1 = vld [vmem:[%s1179_s5 + $0x8] sm:$0xff]  ;;  %p306_p10 = scmp.lt.s32.totalorder %s920_s18, 1  ;;  %s574_s25 = sshll.u32 %s1176_s9, 4 }
  0x75   : > { %v314_v2 = vld [vmem:[%s1179_s5 + $0x10] sm:$0xff]  ;;  %v634_v3 = vpack.c.bf16 %v313_v1, %v312_v0  ;;  %v315_v4 = vld [vmem:[%s1179_s5 + $0x18] sm:$0xff]  ;;  %v316_v6 = vld [vmem:[%s1179_s5 + $0x20] sm:$0xff]  ;;  %s271_s7 = scalar_lea.vmem [#allocation7], %s574_s25  ;;  %s303_s11 = scalar_lea.vmem [#allocation8], %s574_s25 }
  0x76   : > { %v638_v5 = vpack.c.bf16 %v315_v4, %v314_v2  ;;  %v317_v7 = vld [vmem:[%s1179_s5 + $0x28] sm:$0xff]  ;;  %v310_v9 = vld [vmem:[#allocation2] sm:$0xff]  ;;  %v319_v11 = vld [vmem:[%s1179_s5 + $0x38] sm:$0xff]  ;;  %s307_s12 = scalar_select %p306_p10, %s920_s18, 1 }
  0x77   : > { %635 = vmatprep.subr.bf16.mxu0 %v634_v3  ;;  %v642_v8 = vpack.c.bf16 %v317_v7, %v316_v6  ;;  %v318_v10 = vld [vmem:[%s1179_s5 + $0x30] sm:$0xff]  ;;  %631 = vmatprep.mubr.f32.mxu0 %v310_v9  ;;  %v320_v13 = vld [vmem:[%s1179_s5 + $0x40] sm:$0xff]  ;;  %v321_v14 = vld [vmem:[%s1179_s5 + $0x48] sm:$0xff]  ;;  %s434_s22 = sshll.u32 %s303_s11, 4  ;;  %s578_s24 = sshll.u32 %s920_s18, 7  ;;  %s1208_s22 = int_to_ptr.vmem [resolvable:$true] %s434_s22 }
  0x78   : > { %637 = vmatpush3.bf16.msra.mxu0 %v634_v3  ;;  %v646_v12 = vpack.c.bf16 %v319_v11, %v318_v10  ;;  %v650_v15 = vpack.c.bf16 %v321_v14, %v320_v13  ;;  %v322_v16 = vld [vmem:[%s1179_s5 + $0x50] sm:$0xff]  ;;  %v323_v17 = vld [vmem:[%s1179_s5 + $0x58] sm:$0xff]  ;;  %v324_v19 = vld [vmem:[%s1179_s5 + $0x60] sm:$0xff]  ;;  %s308_s30 = scalar_lea.vmem %s1265_s3, %s307_s12  ;;  %s1213_s26 = scalar_lea.hbm %s1266_s4, %s578_s24 }
  0x79   : > { %639 = vmatprep.subr.bf16.mxu0 %v638_v5  ;;  %v654_v18 = vpack.c.bf16 %v323_v17, %v322_v16  ;;  %v325_v20 = vld [vmem:[%s1179_s5 + $0x68] sm:$0xff]  ;;  %v326_v22 = vld [vmem:[%s1179_s5 + $0x70] sm:$0xff]  ;;  %v327_v23 = vld [vmem:[%s1179_s5 + $0x78] sm:$0xff]  ;;  %s419_s14 = scalar_lea.sflag [#allocation4], %s1176_s9  ;;  %s842_s23 = scalar_lea.vmem %s1208_s22, 256 }
  0x7a   : > { %v658_v21 = vpack.c.bf16 %v325_v20, %v324_v19  ;;  %v662_v24 = vpack.c.bf16 %v327_v23, %v326_v22  ;;  %v311_v25 = vld [vmem:[#allocation2 + $0x8] sm:$0xff]  ;;  %v576_v26 = vld [vmem:[%s308_s30] ss:$0 sm:$0xff]  ;;  %p843_p2 = scmp.ne.s32.totalorder %s1208_s22, %s842_s23  ;;  %p1289_p12 = scmp.ne.s32.totalorder %s1277_s6, 0 }
  0x7b   : > { %v411_v28 = vld [vmem:[%s271_s7 + $0x8] sm:$0xff]  ;;  %v410_v31 = vld [vmem:[%s271_s7] sm:$0xff]  ;;  %s936_s18 = smov [#allocation8]  }
  0x7c   : > { %641 = vmatpush3.bf16.msra.mxu0 %v638_v5  ;;  %p844_p0 = pnand %p843_p2, %p1289_p12  ;;  %s846_s5 = sshll.u32 %s936_s18, 4  ;;  %s847_s5 = int_to_ptr.vmem [resolvable:$false] %s846_s5 }
  0x7d   : > { %643 = vmatprep.subr.bf16.mxu0 %v642_v8  ;;  %s848_s12 = scalar_lea.vmem %s847_s5, 512  ;;  %p849_p3 = scmp.lt.s32.totalorder %s1208_s22, %s847_s5 }
  0x7e   : > { %p845_p4 = pneg %p844_p0  ;;  %p850_p5 = scmp.lt.s32.totalorder %s848_s12, %s842_s23 }
  0x80   : > { %645 = vmatpush3.bf16.msra.mxu0 %v642_v8  ;;  %p851_p11 = por %p850_p5, %p849_p3 }
  0x81   : > { %647 = vmatprep.subr.bf16.mxu0 %v646_v12 }
  0x82   : > { %p852_p9 = pnand %p851_p11, %p845_p4 }
  0x84   : > { %649 = vmatpush3.bf16.msra.mxu0 %v646_v12 }
  0x85   : > { %651 = vmatprep.subr.bf16.mxu0 %v650_v15 }
  0x88   : > { %653 = vmatpush3.bf16.msra.mxu0 %v650_v15 }
  0x89   : > { %655 = vmatprep.subr.bf16.mxu0 %v654_v18 }
  0x8c   : > { %657 = vmatpush3.bf16.msra.mxu0 %v654_v18 }
  0x8d   : > { %659 = vmatprep.subr.bf16.mxu0 %v658_v21 }
  0x90   : > { %661 = vmatpush3.bf16.msra.mxu0 %v658_v21 }
  0x91   : > { %663 = vmatprep.subr.bf16.mxu0 %v662_v24 }
  0x94   : > { %665 = vmatpush3.bf16.msra.mxu0 %v662_v24 }
  0x97   : > { %632 = vmatmul.mubr.f32.vlgmr.msra.gmra.mrb[0].mxu0 %v311_v25 }
 0x16a   : > { %v633_v27 = vpop.f32.mrb[0].mxu0 }
 0x16b   : > { %v407_v29 = vadd.f32 %v633_v27, %v576_v26  ;;  %v401_v30 = vpop.f32.mrb[1].mxu0 }
 0x16c   : > { %v402_v32 = vadd.f32 %v576_v26, %v401_v30 }
 0x16d   : > { %v413_v33 = vadd.f32 %v411_v28, %v407_v29 }
 0x16e   : > { %v412_v34 = vadd.f32 %v410_v31, %v402_v32 }
 0x16f   : > { %750 = vtanh.f32 %v413_v33 }
 0x170   : > { %752 = vtanh.f32 %v412_v34 }
 0x179   : > { %v751_v35 = vpop.eup %750 }
 0x17a   : > { %v753_v36 = vpop.eup %752  ;;  %417 = vst [vmem:[%s303_s11 + $0x8] sm:$0xff] %v751_v35 }
 0x17b   : > { %416 = vst [vmem:[%s303_s11] sm:$0xff] %v753_v36 }
 0x17c   : > { %855 = shalt.err (!%p852_p9)
}
 0x17d   : > { %s856_s25 = scalar_lea.hbm %s1213_s26, 256  ;;  %s860_s30 = scalar_lea.hbm %s1266_s4, 512 }
 0x17e   : > { %p857_p8 = scmp.ne.s32.totalorder %s1213_s26, %s856_s25  ;;  %p861_p7 = scmp.lt.u32.totalorder %s1213_s26, %s1266_s4 }
 0x17f   : > { %p862_p13 = scmp.lt.u32.totalorder %s860_s30, %s856_s25  ;;  %p864_p2 = scmp.lt.u32.totalorder %s856_s25, %s1213_s26 }
 0x180   : > { %p858_p6 = pnand %p857_p8, %p1289_p12 }
 0x181   : > { %p863_p10 = por %p862_p13, %p861_p7 }
 0x182   : > { %p859_p1 = pneg %p858_p6 }
 0x183   : > { %p865_p0 = por %p864_p2, %p863_p10 }
 0x185   : > { %p866_p4 = pnand %p865_p0, %p859_p1 }
 0x187   : > { %869 = shalt.err (!%p866_p4)
}
 0x188   : > { %s937_s24 = smov 128   ;;  %s938_s13 = smov 256  }
 0x189   : > { %s939_s28 = smov 8  }
 0x18a   : > { %674 = dma.vmem_to_hbm [thread:$0]  (%p1289_p12), %s1208_s22, 256, %s1213_s26, %s419_s14, %s937_s24, %s938_s13, %s939_s28  }
 0x18b PF: > { %s449_s23 = sand.u32 1, %s908_s15   ;;  %p1290_p3 = scmp.ne.s32.totalorder %s1278_s8, 0 }
 0x18c   : > { %p1291_p5 = scmp.ge.s32.totalorder %s928_s20, 2  ;;  %s450_s18 = scalar_lea.sflag [#allocation4], %s449_s23 }
 0x18e   : > { %p688_p11 = pnand %p1291_p5, %p1290_p3 }
 0x190   : > { %903 = dma.done.wait (!%p688_p11), %s450_s18, 256  }
 0x191   : > { %905 = vsyncadd (!%p688_p11), %s450_s18, 4294967040  ;;  %s21_s20 = sadd.s32 1, %s928_s20   ;;  %s1292_s15 = smov %s912_s16 }
 0x192   : > { %p18_p9 = scmp.ge.s32.totalorder %s21_s20, 4   ;;  %s1293_s16 = smov %s916_s17 }
 0x193   : > { %s1294_s17 = smov %s1016_s27  ;;  %s1295_s18 = smov %s924_s19 }
 0x194   : > { %s1296_s19 = smov %s1298_s21  ;;  %20 = sbr.rel (!%p18_p9) target bundleno = 7 (0x7), region = 101 }
 0x19b   :  { %455 = vsyncpa [#allocation3], 1 }
 0x19c   :  { %457 = vsyncpa [#allocation3 + $0x1], 1 }
 0x19d   :  { %458 = vsyncpa [#allocation6], 1 }
 0x19e   :  { %460 = vsyncpa [#allocation6 + $0x1], 1 }
 0x19f   :  { %461 = vsyncpa [#allocation4], 1 }
 0x1a0   :  { %463 = vsyncpa [#allocation4 + $0x1], 1 }

</bundles_post_ra>
